<compile_context>
chip_gen: v7x
topology: tpu7x:2x2x1
jax: 0.10.0
libtpu: 0.0.40
codegen_flags: <defaults>
</compile_context>

<pallas_src>
import functools
import math

import numpy as np
import jax
import jax.numpy as jnp
from jax.experimental import pallas as pl
from jax.experimental.pallas import tpu as pltpu

_SQRT2 = math.sqrt(2.0)
_LEAKY = 0.01  # PyTorch nn.LeakyReLU default negative_slope


# --------------------------------------------------------------------------
# Fused kernel: affine style -> modulate/demodulate -> 3x3 conv (9 per-tap
#               MXU dots, f32 accumulate) -> + noise*strength -> + bias
#               -> LeakyReLU * sqrt(2)
# grid = (N,): one batch sample per grid step.  No scratch, no memsets.
# --------------------------------------------------------------------------
def _style_layer_kernel(ns_ref, lat_ref, aw_ref, ab_ref, x_ref, w_ref, b_ref,
                        noise_ref, o_ref, *, W, HW):
    # ns_ref   : (1,) f32 in SMEM          noise strength
    # lat_ref  : (1, 1, w_dim) f32         latent, already scaled by 1/sqrt(w_dim)
    # aw_ref   : (C_in_p, w_dim) f32       affine weight (rows zero-padded)
    # ab_ref   : (1, C_in_p) f32           affine bias (zero-padded)
    # x_ref    : (1, C_in_p, L) bf16       halo-padded flattened-spatial activation
    # w_ref    : (9, C_out, C_in_p) bf16   conv weight, tap-major, K zero-padded
    # b_ref    : (C_out, 1) f32            conv bias
    # noise_ref: (1, 1, HW) f32            per-pixel noise (lane dense)
    # o_ref    : (1, C_out, HW) f32

    # ---- fused affine: s = (latent * w_gain) @ affine_w^T + affine_b (f32) ----
    s_row = jax.lax.dot_general(
        lat_ref[0], aw_ref[...], (((1,), (1,)), ((), ())),
        preferred_element_type=jnp.float32) + ab_ref[...]            # (1, C_in_p)

    # ---- modulate + demodulate in f32 (1e-8 eps would underflow in bf16) ----
    # bf16-resident weight is upcast once here; conv w_gain intentionally NOT
    # applied (reproduces the PyTorch quirk).  Zero-padded lanes stay zero.
    w_f32 = w_ref[...].astype(jnp.float32)                           # (9, C_out, C_in_p)
    wmod = w_f32 * s_row[None]                                       # (9, C_out, C_in_p)
    denom = jnp.sum(jnp.sum(wmod * wmod, axis=0), axis=-1, keepdims=True) + 1e-8
    wmod_bf = (wmod * jax.lax.rsqrt(denom)[None]).astype(jnp.bfloat16)  # cast ONCE

    # ---- hoisted periodic column-boundary masks (W is a power of two) ----
    col = jax.lax.broadcasted_iota(jnp.int32, (1, HW), 1) & (W - 1)
    left_ok = col >= 1          # left neighbour invalid at w == 0
    right_ok = col <= W - 2     # right neighbour invalid at w == W-1

    # ---- 9 per-tap MXU dots, accumulated in f32 (no im2col scratch) ----
    acc = None
    for t in range(9):                           # 3x3 taps, t = kh*3 + kw
        kh, kw = t // 3, t % 3
        off = kh * W + kw                        # shift into the halo-padded flat x
        tap = x_ref[0, :, off:off + HW]          # (C_in_p, HW) bf16
        if kw == 0:
            tap = jnp.where(left_ok, tap, 0.0)
        elif kw == 2:
            tap = jnp.where(right_ok, tap, 0.0)
        d = jnp.dot(wmod_bf[t], tap, preferred_element_type=jnp.float32)  # (C_out, HW)
        acc = d if acc is None else acc + d

    out = acc + noise_ref[0] * ns_ref[0] + b_ref[...]
    # LeakyReLU(0.01) * sqrt(2), gain folded into both branches.
    out = jnp.where(out >= 0.0, out * _SQRT2, out * (_LEAKY * _SQRT2))
    o_ref[0] = out.astype(o_ref.dtype)


# --------------------------------------------------------------------------
# Wrapper: StyleLayer.forward
# --------------------------------------------------------------------------
def style_layer_forward(x_nchw, latent, noise_nchw, params):
    N, C_in, H, W = x_nchw.shape
    C_out = params["conv_w"].shape[0]
    w_dim = latent.shape[1]
    HW = H * W
    assert W & (W - 1) == 0, "spatial width must be a power of two (StyleGAN)"
    C_in_p = ((C_in + 7) // 8) * 8              # pad K (input channels) to sublanes
    L = (H + 2) * W + 2                         # halo rows + 1 element front/back

    # Affine: fold w_gain into the tiny latent; pad the output-channel axis once
    # on the host so no in-kernel padding handling is needed (padded s lanes = 0).
    lat = (latent.astype(jnp.float32) * (1.0 / math.sqrt(w_dim))).reshape(N, 1, w_dim)
    aff_w = jnp.pad(params["affine_w"].astype(jnp.float32),
                    ((0, C_in_p - C_in), (0, 0)))                     # (C_in_p, w_dim)
    aff_b = jnp.pad(params["affine_b"].astype(jnp.float32),
                    (0, C_in_p - C_in)).reshape(1, C_in_p)

    # Activations: pad channels to C_in_p, NCHW -> flat spatial with a 1-row halo
    # plus a 1-element front/back halo; bf16 halves HBM bytes.
    xp = jnp.pad(x_nchw, ((0, 0), (0, C_in_p - C_in), (1, 1), (0, 0)))
    x_flat = xp.reshape(N, C_in_p, (H + 2) * W)
    x_flat = jnp.pad(x_flat, ((0, 0), (0, 0), (1, 1))).astype(jnp.bfloat16)  # (N,C_in_p,L)

    # Conv weight -> (tap, C_out, C_in_p), channel padding done ONCE, bf16-resident.
    # TODO(synk): a real module would store the weight pre-arranged like this.
    w9 = jnp.transpose(params["conv_w"], (2, 3, 0, 1)).reshape(9, C_out, C_in)
    w9 = jnp.pad(w9, ((0, 0), (0, 0), (0, C_in_p - C_in))).astype(jnp.bfloat16)
    b_col = params["conv_b"].reshape(C_out, 1).astype(jnp.float32)
    noise_flat = noise_nchw.reshape(N, 1, HW).astype(jnp.float32)    # lane dense

    kern = functools.partial(_style_layer_kernel, W=W, HW=HW)
    out = pl.pallas_call(
        kern,
        out_shape=jax.ShapeDtypeStruct((N, C_out, HW), jnp.float32),
        grid=(N,),
        in_specs=[
            pl.BlockSpec(memory_space=pltpu.MemorySpace.SMEM),        # noise strength
            pl.BlockSpec((1, 1, w_dim), lambda n: (n, 0, 0)),         # latent (scaled)
            pl.BlockSpec((C_in_p, w_dim), lambda n: (0, 0)),          # affine W (resident)
            pl.BlockSpec((1, C_in_p), lambda n: (0, 0)),              # affine b
            pl.BlockSpec((1, C_in_p, L), lambda n: (n, 0, 0)),        # x (bf16, halo pad)
            pl.BlockSpec((9, C_out, C_in_p), lambda n: (0, 0, 0)),    # conv W (bf16, resident)
            pl.BlockSpec((C_out, 1), lambda n: (0, 0)),               # conv bias
            pl.BlockSpec((1, 1, HW), lambda n: (n, 0, 0)),            # noise (lane dense)
        ],
        out_specs=pl.BlockSpec((1, C_out, HW), lambda n: (n, 0, 0)),
        compiler_params=pltpu.CompilerParams(
            dimension_semantics=("parallel",),   # samples across TCs (v7x megacore)
        ),
    )(params["noise_strength"], lat, aff_w, aff_b, x_flat, w9, b_col, noise_flat)

    return out.reshape(N, C_out, H, W)                               # already NCHW


# --------------------------------------------------------------------------
# Pure-JAX reference (same math, f32) for a sanity check.
# --------------------------------------------------------------------------
def reference_forward(x, latent, noise, params):
    N, C_in, H, W = x.shape
    w_gain = 1.0 / np.sqrt(latent.shape[1])
    s = latent @ (params["affine_w"] * w_gain).T + params["affine_b"]
    wc = params["conv_w"]                                  # gain NOT applied (bug repro)
    wmod = wc[None] * s[:, None, :, None, None]            # (N, O, I, 3, 3)
    d = jax.lax.rsqrt(jnp.sum(wmod * wmod, axis=(2, 3, 4), keepdims=True) + 1e-8)
    wmod = wmod * d
    xpad = jnp.pad(x, ((0, 0), (0, 0), (1, 1), (1, 1)))
    y = jnp.zeros((N, wc.shape[0], H, W), jnp.float32)
    for kh in range(3):
        for kw in range(3):
            y = y + jnp.einsum('noc,nchw->nohw', wmod[:, :, :, kh, kw],
                               xpad[:, :, kh:kh + H, kw:kw + W])
    y = y + noise * params["noise_strength"][0]
    y = y + params["conv_b"][None, :, None, None]
    return jnp.where(y >= 0.0, y, 0.01 * y) * np.sqrt(2.0)


if __name__ == "__main__":
    N, C_in, C_out, H, W, w_dim = 2, 4, 8, 16, 16, 32

    key = jax.random.PRNGKey(0)
    k1, k2, k3, k4, k5 = jax.random.split(key, 5)

    x = jax.random.normal(k1, (N, C_in, H, W), jnp.float32)
    latent = jax.random.normal(k2, (N, w_dim), jnp.float32)

    # Deterministic "parameter init" mirroring the module __init__ shapes.
    params = dict(
        affine_w=jax.random.normal(k3, (C_in, w_dim), jnp.float32),   # (out=in_c, in=w_dim)
        affine_b=jnp.full((C_in,), 1.0, jnp.float32),                 # bias_init = 1.0
        conv_w=jax.random.normal(k4, (C_out, C_in, 3, 3), jnp.float32),
        conv_b=jnp.zeros((C_out,), jnp.float32),
        noise_strength=jnp.full((1,), 0.1, jnp.float32),              # nonzero: exercise noise path
    )

    # TODO(synk): the PyTorch module samples noise with torch.randn inside
    # forward; here it is sampled deterministically on the host and passed in.
    noise = jax.random.normal(k5, (N, 1, H, W), jnp.float32)

    out = style_layer_forward(x, latent, noise, params)
    out = jax.block_until_ready(out)

    ref = reference_forward(x, latent, noise, params)
    # Tolerance covers bf16 MXU operands and the bf16-resident weight
    # (modulation/demodulation and accumulation stay in f32).
    np.testing.assert_allclose(np.asarray(out), np.asarray(ref),
                               rtol=2e-2, atol=3e-2)
    print("KERNEL_OK")
</pallas_src>

<mosaic_0001>
module attributes {stable_mosaic.version = 11 : i64} {
  func.func @_style_layer_kernel(%arg0: i32, %arg1: memref<1xf32, #tpu.memory_space<smem>>, %arg2: memref<1x1x32xf32, #tpu.memory_space<vmem>>, %arg3: memref<8x32xf32, #tpu.memory_space<vmem>>, %arg4: memref<1x8xf32, #tpu.memory_space<vmem>>, %arg5: memref<1x8x290xbf16, #tpu.memory_space<vmem>>, %arg6: memref<9x8x8xbf16, #tpu.memory_space<vmem>>, %arg7: memref<8x1xf32, #tpu.memory_space<vmem>>, %arg8: memref<1x1x256xf32, #tpu.memory_space<vmem>>, %arg9: memref<1x8x256xf32, #tpu.memory_space<vmem>>) attributes {dimension_semantics = [#tpu.dimension_semantics<parallel>], iteration_bounds = array<i64: 2>, scalar_prefetch = 0 : i64, scratch_operands = 0 : i64, tpu.core_type = #tpu.core_type<tc>, window_params = [{transform_indices = @transform_0, window_bounds = array<i64: 1>}, {transform_indices = @transform_1, window_bounds = array<i64: 1, 1, 32>}, {pipeline_mode = #tpu.pipeline_mode<synchronous>, transform_indices = @transform_2, window_bounds = array<i64: 8, 32>}, {pipeline_mode = #tpu.pipeline_mode<synchronous>, transform_indices = @transform_3, window_bounds = array<i64: 1, 8>}, {transform_indices = @transform_4, window_bounds = array<i64: 1, 8, 290>}, {pipeline_mode = #tpu.pipeline_mode<synchronous>, transform_indices = @transform_5, window_bounds = array<i64: 9, 8, 8>}, {pipeline_mode = #tpu.pipeline_mode<synchronous>, transform_indices = @transform_6, window_bounds = array<i64: 8, 1>}, {transform_indices = @transform_7, window_bounds = array<i64: 1, 1, 256>}, {transform_indices = @transform_8, window_bounds = array<i64: 1, 8, 256>}]} {
    %c0 = arith.constant 0 : index
    %c0_0 = arith.constant 0 : index
    %c0_1 = arith.constant 0 : index
    %0 = vector.load %arg2[%c0, %c0_0, %c0_1] : memref<1x1x32xf32, #tpu.memory_space<vmem>>, vector<1x1x32xf32>
    %1 = vector.shape_cast %0 : vector<1x1x32xf32> to vector<1x32xf32>
    %c0_2 = arith.constant 0 : index
    %c0_3 = arith.constant 0 : index
    %2 = vector.load %arg3[%c0_2, %c0_3] : memref<8x32xf32, #tpu.memory_space<vmem>>, vector<8x32xf32>
    %cst = arith.constant dense<0.000000e+00> : vector<1x8xf32>
    %3 = tpu.matmul %1, %2, %cst {dimension_numbers = #tpu.dot_dimension_numbers<[1], [1], [0], [0], [0, 0, 1, 0], [], []>} : vector<1x32xf32>, vector<8x32xf32>, vector<1x8xf32> -> vector<1x8xf32>
    %c0_4 = arith.constant 0 : index
    %c0_5 = arith.constant 0 : index
    %4 = vector.load %arg4[%c0_4, %c0_5] : memref<1x8xf32, #tpu.memory_space<vmem>>, vector<1x8xf32>
    %5 = arith.addf %3, %4 : vector<1x8xf32>
    %c0_6 = arith.constant 0 : index
    %c0_7 = arith.constant 0 : index
    %c0_8 = arith.constant 0 : index
    %6 = vector.load %arg6[%c0_6, %c0_7, %c0_8] : memref<9x8x8xbf16, #tpu.memory_space<vmem>>, vector<9x8x8xbf16>
    %7 = arith.extf %6 : vector<9x8x8xbf16> to vector<9x8x8xf32>
    %8 = vector.shape_cast %5 : vector<1x8xf32> to vector<1x1x8xf32>
    %9 = vector.broadcast %8 : vector<1x1x8xf32> to vector<9x8x8xf32>
    %10 = arith.mulf %7, %9 : vector<9x8x8xf32>
    %11 = arith.mulf %10, %10 : vector<9x8x8xf32>
    %cst_9 = arith.constant dense<0.000000e+00> : vector<8x8xf32>
    %12 = vector.multi_reduction <add>, %11, %cst_9 [0] : vector<9x8x8xf32> to vector<8x8xf32>
    %cst_10 = arith.constant dense<0.000000e+00> : vector<8xf32>
    %13 = vector.multi_reduction <add>, %12, %cst_10 [1] : vector<8x8xf32> to vector<8xf32>
    %14 = vector.shape_cast %13 : vector<8xf32> to vector<8x1xf32>
    %cst_11 = arith.constant 9.99999993E-9 : f32
    %15 = vector.broadcast %cst_11 : f32 to vector<8x1xf32>
    %16 = arith.addf %14, %15 : vector<8x1xf32>
    %17 = math.rsqrt %16 : vector<8x1xf32>
    %18 = vector.shape_cast %17 : vector<8x1xf32> to vector<1x8x1xf32>
    %19 = vector.broadcast %18 : vector<1x8x1xf32> to vector<9x8x8xf32>
    %20 = arith.mulf %10, %19 : vector<9x8x8xf32>
    %21 = arith.truncf %20 : vector<9x8x8xf32> to vector<9x8x8xbf16>
    %22 = tpu.iota {dimensions = array<i32: 1>} : vector<1x256xi32>
    %c15_i32 = arith.constant 15 : i32
    %23 = vector.broadcast %c15_i32 : i32 to vector<1x256xi32>
    %24 = arith.andi %22, %23 : vector<1x256xi32>
    %c1_i32 = arith.constant 1 : i32
    %25 = vector.broadcast %c1_i32 : i32 to vector<1x256xi32>
    %26 = arith.cmpi sge, %24, %25 : vector<1x256xi32>
    %c14_i32 = arith.constant 14 : i32
    %27 = vector.broadcast %c14_i32 : i32 to vector<1x256xi32>
    %28 = arith.cmpi sle, %24, %27 : vector<1x256xi32>
    %c0_12 = arith.constant 0 : index
    %c0_13 = arith.constant 0 : index
    %c0_14 = arith.constant 0 : index
    %29 = vector.load %arg5[%c0_12, %c0_13, %c0_14] : memref<1x8x290xbf16, #tpu.memory_space<vmem>>, vector<1x8x256xbf16>
    %30 = vector.shape_cast %29 : vector<1x8x256xbf16> to vector<8x256xbf16>
    %cst_15 = arith.constant 0.000000e+00 : f32
    %31 = arith.truncf %cst_15 : f32 to bf16
    %32 = vector.shape_cast %26 : vector<1x256xi1> to vector<1x256xi1>
    %33 = vector.broadcast %32 : vector<1x256xi1> to vector<8x256xi1>
    %34 = vector.broadcast %31 : bf16 to vector<8x256xbf16>
    %35 = arith.select %33, %30, %34 : vector<8x256xi1>, vector<8x256xbf16>
    %36 = vector.extract_strided_slice %21 {offsets = [0, 0, 0], sizes = [1, 8, 8], strides = [1, 1, 1]} : vector<9x8x8xbf16> to vector<1x8x8xbf16>
    %37 = vector.shape_cast %36 : vector<1x8x8xbf16> to vector<8x8xbf16>
    %cst_16 = arith.constant dense<0.000000e+00> : vector<8x256xf32>
    %38 = tpu.matmul %37, %35, %cst_16 {dimension_numbers = #tpu.dot_dimension_numbers<[1], [0], [0], [1], [0, 0, 1, 1], [], []>} : vector<8x8xbf16>, vector<8x256xbf16>, vector<8x256xf32> -> vector<8x256xf32>
    %c0_17 = arith.constant 0 : index
    %c0_18 = arith.constant 0 : index
    %c1 = arith.constant 1 : index
    %39 = vector.load %arg5[%c0_17, %c0_18, %c1] : memref<1x8x290xbf16, #tpu.memory_space<vmem>>, vector<1x8x256xbf16>
    %40 = vector.shape_cast %39 : vector<1x8x256xbf16> to vector<8x256xbf16>
    %41 = vector.extract_strided_slice %21 {offsets = [1, 0, 0], sizes = [1, 8, 8], strides = [1, 1, 1]} : vector<9x8x8xbf16> to vector<1x8x8xbf16>
    %42 = vector.shape_cast %41 : vector<1x8x8xbf16> to vector<8x8xbf16>
    %cst_19 = arith.constant dense<0.000000e+00> : vector<8x256xf32>
    %43 = tpu.matmul %42, %40, %cst_19 {dimension_numbers = #tpu.dot_dimension_numbers<[1], [0], [0], [1], [0, 0, 1, 1], [], []>} : vector<8x8xbf16>, vector<8x256xbf16>, vector<8x256xf32> -> vector<8x256xf32>
    %44 = arith.addf %38, %43 : vector<8x256xf32>
    %c0_20 = arith.constant 0 : index
    %c0_21 = arith.constant 0 : index
    %c2 = arith.constant 2 : index
    %45 = vector.load %arg5[%c0_20, %c0_21, %c2] : memref<1x8x290xbf16, #tpu.memory_space<vmem>>, vector<1x8x256xbf16>
    %46 = vector.shape_cast %45 : vector<1x8x256xbf16> to vector<8x256xbf16>
    %cst_22 = arith.constant 0.000000e+00 : f32
    %47 = arith.truncf %cst_22 : f32 to bf16
    %48 = vector.shape_cast %28 : vector<1x256xi1> to vector<1x256xi1>
    %49 = vector.broadcast %48 : vector<1x256xi1> to vector<8x256xi1>
    %50 = vector.broadcast %47 : bf16 to vector<8x256xbf16>
    %51 = arith.select %49, %46, %50 : vector<8x256xi1>, vector<8x256xbf16>
    %52 = vector.extract_strided_slice %21 {offsets = [2, 0, 0], sizes = [1, 8, 8], strides = [1, 1, 1]} : vector<9x8x8xbf16> to vector<1x8x8xbf16>
    %53 = vector.shape_cast %52 : vector<1x8x8xbf16> to vector<8x8xbf16>
    %cst_23 = arith.constant dense<0.000000e+00> : vector<8x256xf32>
    %54 = tpu.matmul %53, %51, %cst_23 {dimension_numbers = #tpu.dot_dimension_numbers<[1], [0], [0], [1], [0, 0, 1, 1], [], []>} : vector<8x8xbf16>, vector<8x256xbf16>, vector<8x256xf32> -> vector<8x256xf32>
    %55 = arith.addf %44, %54 : vector<8x256xf32>
    %c0_24 = arith.constant 0 : index
    %c0_25 = arith.constant 0 : index
    %c16 = arith.constant 16 : index
    %56 = vector.load %arg5[%c0_24, %c0_25, %c16] : memref<1x8x290xbf16, #tpu.memory_space<vmem>>, vector<1x8x256xbf16>
    %57 = vector.shape_cast %56 : vector<1x8x256xbf16> to vector<8x256xbf16>
    %cst_26 = arith.constant 0.000000e+00 : f32
    %58 = arith.truncf %cst_26 : f32 to bf16
    %59 = vector.shape_cast %26 : vector<1x256xi1> to vector<1x256xi1>
    %60 = vector.broadcast %59 : vector<1x256xi1> to vector<8x256xi1>
    %61 = vector.broadcast %58 : bf16 to vector<8x256xbf16>
    %62 = arith.select %60, %57, %61 : vector<8x256xi1>, vector<8x256xbf16>
    %63 = vector.extract_strided_slice %21 {offsets = [3, 0, 0], sizes = [1, 8, 8], strides = [1, 1, 1]} : vector<9x8x8xbf16> to vector<1x8x8xbf16>
    %64 = vector.shape_cast %63 : vector<1x8x8xbf16> to vector<8x8xbf16>
    %cst_27 = arith.constant dense<0.000000e+00> : vector<8x256xf32>
    %65 = tpu.matmul %64, %62, %cst_27 {dimension_numbers = #tpu.dot_dimension_numbers<[1], [0], [0], [1], [0, 0, 1, 1], [], []>} : vector<8x8xbf16>, vector<8x256xbf16>, vector<8x256xf32> -> vector<8x256xf32>
    %66 = arith.addf %55, %65 : vector<8x256xf32>
    %c0_28 = arith.constant 0 : index
    %c0_29 = arith.constant 0 : index
    %c17 = arith.constant 17 : index
    %67 = vector.load %arg5[%c0_28, %c0_29, %c17] : memref<1x8x290xbf16, #tpu.memory_space<vmem>>, vector<1x8x256xbf16>
    %68 = vector.shape_cast %67 : vector<1x8x256xbf16> to vector<8x256xbf16>
    %69 = vector.extract_strided_slice %21 {offsets = [4, 0, 0], sizes = [1, 8, 8], strides = [1, 1, 1]} : vector<9x8x8xbf16> to vector<1x8x8xbf16>
    %70 = vector.shape_cast %69 : vector<1x8x8xbf16> to vector<8x8xbf16>
    %cst_30 = arith.constant dense<0.000000e+00> : vector<8x256xf32>
    %71 = tpu.matmul %70, %68, %cst_30 {dimension_numbers = #tpu.dot_dimension_numbers<[1], [0], [0], [1], [0, 0, 1, 1], [], []>} : vector<8x8xbf16>, vector<8x256xbf16>, vector<8x256xf32> -> vector<8x256xf32>
    %72 = arith.addf %66, %71 : vector<8x256xf32>
    %c0_31 = arith.constant 0 : index
    %c0_32 = arith.constant 0 : index
    %c18 = arith.constant 18 : index
    %73 = vector.load %arg5[%c0_31, %c0_32, %c18] : memref<1x8x290xbf16, #tpu.memory_space<vmem>>, vector<1x8x256xbf16>
    %74 = vector.shape_cast %73 : vector<1x8x256xbf16> to vector<8x256xbf16>
    %cst_33 = arith.constant 0.000000e+00 : f32
    %75 = arith.truncf %cst_33 : f32 to bf16
    %76 = vector.shape_cast %28 : vector<1x256xi1> to vector<1x256xi1>
    %77 = vector.broadcast %76 : vector<1x256xi1> to vector<8x256xi1>
    %78 = vector.broadcast %75 : bf16 to vector<8x256xbf16>
    %79 = arith.select %77, %74, %78 : vector<8x256xi1>, vector<8x256xbf16>
    %80 = vector.extract_strided_slice %21 {offsets = [5, 0, 0], sizes = [1, 8, 8], strides = [1, 1, 1]} : vector<9x8x8xbf16> to vector<1x8x8xbf16>
    %81 = vector.shape_cast %80 : vector<1x8x8xbf16> to vector<8x8xbf16>
    %cst_34 = arith.constant dense<0.000000e+00> : vector<8x256xf32>
    %82 = tpu.matmul %81, %79, %cst_34 {dimension_numbers = #tpu.dot_dimension_numbers<[1], [0], [0], [1], [0, 0, 1, 1], [], []>} : vector<8x8xbf16>, vector<8x256xbf16>, vector<8x256xf32> -> vector<8x256xf32>
    %83 = arith.addf %72, %82 : vector<8x256xf32>
    %c0_35 = arith.constant 0 : index
    %c0_36 = arith.constant 0 : index
    %c32 = arith.constant 32 : index
    %84 = vector.load %arg5[%c0_35, %c0_36, %c32] : memref<1x8x290xbf16, #tpu.memory_space<vmem>>, vector<1x8x256xbf16>
    %85 = vector.shape_cast %84 : vector<1x8x256xbf16> to vector<8x256xbf16>
    %cst_37 = arith.constant 0.000000e+00 : f32
    %86 = arith.truncf %cst_37 : f32 to bf16
    %87 = vector.shape_cast %26 : vector<1x256xi1> to vector<1x256xi1>
    %88 = vector.broadcast %87 : vector<1x256xi1> to vector<8x256xi1>
    %89 = vector.broadcast %86 : bf16 to vector<8x256xbf16>
    %90 = arith.select %88, %85, %89 : vector<8x256xi1>, vector<8x256xbf16>
    %91 = vector.extract_strided_slice %21 {offsets = [6, 0, 0], sizes = [1, 8, 8], strides = [1, 1, 1]} : vector<9x8x8xbf16> to vector<1x8x8xbf16>
    %92 = vector.shape_cast %91 : vector<1x8x8xbf16> to vector<8x8xbf16>
    %cst_38 = arith.constant dense<0.000000e+00> : vector<8x256xf32>
    %93 = tpu.matmul %92, %90, %cst_38 {dimension_numbers = #tpu.dot_dimension_numbers<[1], [0], [0], [1], [0, 0, 1, 1], [], []>} : vector<8x8xbf16>, vector<8x256xbf16>, vector<8x256xf32> -> vector<8x256xf32>
    %94 = arith.addf %83, %93 : vector<8x256xf32>
    %c0_39 = arith.constant 0 : index
    %c0_40 = arith.constant 0 : index
    %c33 = arith.constant 33 : index
    %95 = vector.load %arg5[%c0_39, %c0_40, %c33] : memref<1x8x290xbf16, #tpu.memory_space<vmem>>, vector<1x8x256xbf16>
    %96 = vector.shape_cast %95 : vector<1x8x256xbf16> to vector<8x256xbf16>
    %97 = vector.extract_strided_slice %21 {offsets = [7, 0, 0], sizes = [1, 8, 8], strides = [1, 1, 1]} : vector<9x8x8xbf16> to vector<1x8x8xbf16>
    %98 = vector.shape_cast %97 : vector<1x8x8xbf16> to vector<8x8xbf16>
    %cst_41 = arith.constant dense<0.000000e+00> : vector<8x256xf32>
    %99 = tpu.matmul %98, %96, %cst_41 {dimension_numbers = #tpu.dot_dimension_numbers<[1], [0], [0], [1], [0, 0, 1, 1], [], []>} : vector<8x8xbf16>, vector<8x256xbf16>, vector<8x256xf32> -> vector<8x256xf32>
    %100 = arith.addf %94, %99 : vector<8x256xf32>
    %c0_42 = arith.constant 0 : index
    %c0_43 = arith.constant 0 : index
    %c34 = arith.constant 34 : index
    %101 = vector.load %arg5[%c0_42, %c0_43, %c34] : memref<1x8x290xbf16, #tpu.memory_space<vmem>>, vector<1x8x256xbf16>
    %102 = vector.shape_cast %101 : vector<1x8x256xbf16> to vector<8x256xbf16>
    %cst_44 = arith.constant 0.000000e+00 : f32
    %103 = arith.truncf %cst_44 : f32 to bf16
    %104 = vector.shape_cast %28 : vector<1x256xi1> to vector<1x256xi1>
    %105 = vector.broadcast %104 : vector<1x256xi1> to vector<8x256xi1>
    %106 = vector.broadcast %103 : bf16 to vector<8x256xbf16>
    %107 = arith.select %105, %102, %106 : vector<8x256xi1>, vector<8x256xbf16>
    %108 = vector.extract_strided_slice %21 {offsets = [8, 0, 0], sizes = [1, 8, 8], strides = [1, 1, 1]} : vector<9x8x8xbf16> to vector<1x8x8xbf16>
    %109 = vector.shape_cast %108 : vector<1x8x8xbf16> to vector<8x8xbf16>
    %cst_45 = arith.constant dense<0.000000e+00> : vector<8x256xf32>
    %110 = tpu.matmul %109, %107, %cst_45 {dimension_numbers = #tpu.dot_dimension_numbers<[1], [0], [0], [1], [0, 0, 1, 1], [], []>} : vector<8x8xbf16>, vector<8x256xbf16>, vector<8x256xf32> -> vector<8x256xf32>
    %111 = arith.addf %100, %110 : vector<8x256xf32>
    %c0_46 = arith.constant 0 : index
    %c0_47 = arith.constant 0 : index
    %c0_48 = arith.constant 0 : index
    %112 = vector.load %arg8[%c0_46, %c0_47, %c0_48] : memref<1x1x256xf32, #tpu.memory_space<vmem>>, vector<1x1x256xf32>
    %113 = vector.shape_cast %112 : vector<1x1x256xf32> to vector<1x256xf32>
    %c0_49 = arith.constant 0 : index
    %114 = memref.load %arg1[%c0_49] : memref<1xf32, #tpu.memory_space<smem>>
    %115 = vector.broadcast %114 : f32 to vector<1x256xf32>
    %116 = arith.mulf %113, %115 : vector<1x256xf32>
    %117 = vector.broadcast %116 : vector<1x256xf32> to vector<8x256xf32>
    %118 = arith.addf %111, %117 : vector<8x256xf32>
    %c0_50 = arith.constant 0 : index
    %c0_51 = arith.constant 0 : index
    %119 = vector.load %arg7[%c0_50, %c0_51] : memref<8x1xf32, #tpu.memory_space<vmem>>, vector<8x1xf32>
    %120 = vector.broadcast %119 : vector<8x1xf32> to vector<8x256xf32>
    %121 = arith.addf %118, %120 : vector<8x256xf32>
    %cst_52 = arith.constant 0.000000e+00 : f32
    %122 = vector.broadcast %cst_52 : f32 to vector<8x256xf32>
    %123 = arith.cmpf oge, %121, %122 : vector<8x256xf32>
    %cst_53 = arith.constant 1.41421354 : f32
    %124 = vector.broadcast %cst_53 : f32 to vector<8x256xf32>
    %125 = arith.mulf %121, %124 : vector<8x256xf32>
    %cst_54 = arith.constant 0.0141421352 : f32
    %126 = vector.broadcast %cst_54 : f32 to vector<8x256xf32>
    %127 = arith.mulf %121, %126 : vector<8x256xf32>
    %128 = arith.select %123, %125, %127 : vector<8x256xi1>, vector<8x256xf32>
    %c0_55 = arith.constant 0 : index
    %c0_56 = arith.constant 0 : index
    %c0_57 = arith.constant 0 : index
    %129 = vector.load %arg9[%c0_55, %c0_56, %c0_57] : memref<1x8x256xf32, #tpu.memory_space<vmem>>, vector<1x8x256xf32>
    %130 = vector.shape_cast %129 : vector<1x8x256xf32> to vector<8x256xf32>
    %131 = vector.shape_cast %128 : vector<8x256xf32> to vector<1x8x256xf32>
    tpu.vector_store %arg9[%c0_55, %c0_56, %c0_57], %131 {strides = array<i32>} : memref<1x8x256xf32, #tpu.memory_space<vmem>>, vector<1x8x256xf32>,
    return
  }
  func.func @transform_0(%arg0: i32) -> i32 {
    %c0_i32 = arith.constant 0 : i32
    %c0_i32_0 = arith.constant 0 : i32
    return %c0_i32 : i32
  }
  func.func @transform_1(%arg0: i32) -> (i32, i32, i32) {
    %c0_i32 = arith.constant 0 : i32
    %c0_i32_0 = arith.constant 0 : i32
    %c0_i32_1 = arith.constant 0 : i32
    return %arg0, %c0_i32, %c0_i32_0 : i32, i32, i32
  }
  func.func @transform_2(%arg0: i32) -> (i32, i32) {
    %c0_i32 = arith.constant 0 : i32
    %c0_i32_0 = arith.constant 0 : i32
    %c0_i32_1 = arith.constant 0 : i32
    return %c0_i32, %c0_i32_0 : i32, i32
  }
  func.func @transform_3(%arg0: i32) -> (i32, i32) {
    %c0_i32 = arith.constant 0 : i32
    %c0_i32_0 = arith.constant 0 : i32
    %c0_i32_1 = arith.constant 0 : i32
    return %c0_i32, %c0_i32_0 : i32, i32
  }
  func.func @transform_4(%arg0: i32) -> (i32, i32, i32) {
    %c0_i32 = arith.constant 0 : i32
    %c0_i32_0 = arith.constant 0 : i32
    %c0_i32_1 = arith.constant 0 : i32
    return %arg0, %c0_i32, %c0_i32_0 : i32, i32, i32
  }
  func.func @transform_5(%arg0: i32) -> (i32, i32, i32) {
    %c0_i32 = arith.constant 0 : i32
    %c0_i32_0 = arith.constant 0 : i32
    %c0_i32_1 = arith.constant 0 : i32
    %c0_i32_2 = arith.constant 0 : i32
    return %c0_i32, %c0_i32_0, %c0_i32_1 : i32, i32, i32
  }
  func.func @transform_6(%arg0: i32) -> (i32, i32) {
    %c0_i32 = arith.constant 0 : i32
    %c0_i32_0 = arith.constant 0 : i32
    %c0_i32_1 = arith.constant 0 : i32
    return %c0_i32, %c0_i32_0 : i32, i32
  }
  func.func @transform_7(%arg0: i32) -> (i32, i32, i32) {
    %c0_i32 = arith.constant 0 : i32
    %c0_i32_0 = arith.constant 0 : i32
    %c0_i32_1 = arith.constant 0 : i32
    return %arg0, %c0_i32, %c0_i32_0 : i32, i32, i32
  }
  func.func @transform_8(%arg0: i32) -> (i32, i32, i32) {
    %c0_i32 = arith.constant 0 : i32
    %c0_i32_0 = arith.constant 0 : i32
    %c0_i32_1 = arith.constant 0 : i32
    return %arg0, %c0_i32, %c0_i32_0 : i32, i32, i32
  }
}

</mosaic_0001>

<bundles_post_ra>
// kernel: tpu_custom_call.1
= control target key start
LH: loop header
LB: loop body
LE: loop exit
PB: predicated region body
PF: predicated region fallthrough
CT: control target
= control target key end

     0   :  { %s1917_s0 = inlined_call_operand.<no memory space> [shape: f32[1], index: 0, kind: input, shape index: {}]   ;;  %s1918_s1 = inlined_call_operand.vmem [shape: f32[2,1,32], index: 1, kind: input, shape index: {}]   ;;  %s1919_s2 = inlined_call_operand.vmem [shape: f32[8,32], index: 2, kind: input, shape index: {}]   ;;  %s1920_s3 = inlined_call_operand.vmem [shape: f32[1,8], index: 3, kind: input, shape index: {}]   ;;  %s1921_s4 = inlined_call_operand.vmem [shape: bf16[2,8,290], index: 4, kind: input, shape index: {}]   ;;  %s1922_s5 = inlined_call_operand.vmem [shape: bf16[9,8,8], index: 5, kind: input, shape index: {}]   ;;  %s1923_s6 = inlined_call_operand.vmem [shape: f32[8,1], index: 6, kind: input, shape index: {}]   ;;  %s1924_s7 = inlined_call_operand.vmem [shape: f32[2,1,256], index: 7, kind: input, shape index: {}]   ;;  %s1925_s8 = inlined_call_operand.hbm [shape: f32[2,8,256], index: 8, kind: output, shape index: {}]  }
   0x1   :  { %13 = sst [smem:[#allocation2]] %s1917_s0 }
   0x2   :  { %14 = vsyncpa [#allocation4], 0 }
   0x3   :  { %16 = vsyncpa [#allocation4 + $0x1], 0  ;;  %s1560_s29 = smov 0   ;;  %s1562_s30 = smov 0  }
   0x4   :  { %s1564_s9 = smov 0   ;;  %s1566_s10 = smov 0  }
   0x5 LB: > { %s1581_s0 = sadd.s32 4294967295, %s1493_s10   ;;  %s1289_s11 = sadd.s32 4294967294, %s1493_s10   ;;  %s1493_s10 = sphi %s1566_s10, %s1935_s10   ;;  %s1489_s9 = sphi %s1564_s9, %s1934_s9   ;;  %s1485_s30 = sphi %s1562_s30, %s1933_s30   ;;  %s1481_s29 = sphi %s1560_s29, %s1932_s29  }
   0x6   : > { %s1585_s12 = sadd.s32 1, %s1493_s10   ;;  %s212_s13 = sadd.s32 1, %s1489_s9 }
   0x7   : > { %s209_s14 = ssub.s32 %s1493_s10, %s1585_s12  ;;  %p222_p0 = scmp.ne.s32.totalorder %s1489_s9, %s1485_s30 }
   0x8   : > { %p210_p1 = scmp.eq.s32.totalorder %s209_s14, 0  ;;  %p223_p2 = scmp.eq.s32.totalorder %s1581_s0, 1 }
   0x9   : > { %p228_p3 = scmp.ne.s32.totalorder %s1485_s30, %s1481_s29  ;;  %p229_p4 = scmp.eq.s32.totalorder %s1289_s11, 1 }
   0xa   : > { %s1596_s15 = scalar_select %p210_p1, %s1489_s9, %s212_s13  }
   0xb   : > { %p1598_p5 = por %p223_p2, %p222_p0  ;;  %p1602_p6 = por %p229_p4, %p228_p3 }
   0xc   : > { %p1292_p7 = scmp.ge.s32.totalorder %s1493_s10, 1  ;;  %p283_p8 = scmp.lt.s32.totalorder %s1493_s10, 3 }
   0xe   : > { %p284_p9 = pnand %p1292_p7, %p283_p8 }
   0xf   : > { %v340_v0 = vld [vmem:[%s1919_s2] sm:$0xff] (!%p284_p9)  ;;  %vm342_vm0 = vcmask (!%p284_p9), 261120   ;;  %p324_p10 = scmp.lt.s32.totalorder (!%p284_p9), %s1581_s0, 1  ;;  %v437_v1 = vlaneseq (!%p284_p9)  ;;  %v1495_v2 = vmov (!%p284_p9), 0.0   ;;  %vm1496_vm1 = vmmov (!%p284_p9), 0   ;;  %s1498_s24 = smov (!%p284_p9), 2  }
  0x10   : > { %287 = sbr.rel (%p284_p9) target bundleno = 692 (0x2b4), region = 52  ;;  %1363 = vmatprep.subr.mxu0 (!%p284_p9), %v1495_v2  ;;  %1365 = vmatprep.mubr.msk.f32.mxu0 (!%p284_p9), %vm1496_vm1, %v1495_v2  ;;  %v1497_v4 = vmov (!%p284_p9), 0   ;;  %s1499_s25 = smov (!%p284_p9), 18   ;;  %vm649_vm8 = vcmask (!%p284_p9), 15360   ;;  %vm728_vm10 = vcmask (!%p284_p9), 130048   ;;  %vm867_vm15 = vcmask (!%p284_p9), 146432  }
  0x11   : > { %1364 = vmatpush3.xpose.msk.msra.mxu0 (!%p284_p9), %vm342_vm0, %v340_v0  ;;  %v501_v3 = vand.u32 (!%p284_p9), 127, %v437_v1  ;;  %576 = vmatprep.mubr.bf16.mxu1 (!%p284_p9), %v1497_v4  ;;  %s1500_s26 = smov (!%p284_p9), 16   ;;  %s1501_s27 = smov (!%p284_p9), 32   ;;  %vm537_vm1 = vcmask (!%p284_p9), 1043456   ;;  %v1710_v60 = vshrl.u32 (!%p284_p9), %v437_v1, 7  ;;  %v1343_v63 = vld [vmem:[%s1922_s5] sm:$0xff] (!%p284_p9)  }
  0x12   : > { %1424 = vset.pattern.permute.xlu1 (!%p284_p9), %v1497_v4  ;;  %1425 = vset.pattern.permute.xlu0 (!%p284_p9), %v1497_v4  ;;  %s1502_s28 = smov (!%p284_p9), 34   ;;  %s1503_s19 = smov (!%p284_p9), 127   ;;  %v341_v0 = vld [vmem:[%s1920_s3] sm:$0x1] (!%p284_p9)  ;;  %v1358_v2 = vld [vmem:[%s1922_s5 + $0x8] sm:$0xff] (!%p284_p9)  }
  0x13   : > { %v502_v5 = vadd.s32 (!%p284_p9), 128, %v501_v3  ;;  %v503_v6 = vand.u32 (!%p284_p9), 15, %v501_v3  ;;  %s1504_s21 = smov (!%p284_p9), 126   ;;  %s1505_s22 = smov (!%p284_p9), 112   ;;  %v439_v3 = vsub.s32 (!%p284_p9), 0, %v1710_v60 }
  0x15   : > { %v504_v8 = vand.u32 (!%p284_p9), 15, %v502_v5  ;;  %vm507_vm2 = vcmp.le.s32.totalorder (!%p284_p9), %v503_v6, 14  ;;  %vm1625_vm3 = vcmp.ge.s32.totalorder (!%p284_p9), %v503_v6, 1 }
  0x17   : > { %s1614_s20 = scalar_select %p324_p10, %s1581_s0, 1  ;;  %vm508_vm4 = vcmp.le.s32.totalorder %v504_v8, 14  ;;  %vm1630_vm5 = vcmp.ge.s32.totalorder %v504_v8, 1  ;;  %v1359_v8 = vld [vmem:[%s1922_s5 + $0x10] sm:$0xff]  }
  0x18   : > { %vm644_vm6 = vmpackc.low %vm508_vm4, %vm507_vm2 }
  0x19   : > { %s326_s23 = scalar_lea.vmem %s1918_s1, %s1614_s20  ;;  %v645_v11 = vsel %vm644_vm6, 65537, %v1497_v4  ;;  %vm514_vm7 = vmpackc.low %vm1630_vm5, %vm1625_vm3  ;;  %s1368_s11 = smul.u32 12, %s1614_s20 }
  0x1a   : > { %v339_v7 = vld [vmem:[%s326_s23] sm:$0x1]  ;;  %646 = vrot.lane.b32.xlu0 %v645_v11, %s1498_s24  ;;  %864 = vrot.lane.b32.xlu1 %v645_v11, %s1499_s25  ;;  %v724_v12 = vsel %vm514_vm7, 65537, %v1497_v4  ;;  %s1506_s23 = smov 111   ;;  %s1507_s24 = smov 110  }
  0x1b   : > { %1366 = vmatmul.mubr.msk.f32.vlgmr.msra.gmra.mrb[0].mxu0 %vm342_vm0, %v339_v7  ;;  %s331_s18 = scalar_lea.vmem %s1921_s4, %s1368_s11  ;;  %s1508_s25 = smov 96   ;;  %v1344_v7 = vunpack.c.l.bf16 %v1343_v63 }
  0x1c   : > { %631 = vmatprep.mubr.bf16.mxu0 %v1497_v4  ;;  %v1649_v13 = vld [vmem:[%s331_s18] sm:$0xff]  ;;  %v1660_v16 = vld [vmem:[%s331_s18 + $0x8] sm:$0xf] }
  0x1d   : > { %v1653_v14 = vcombine.low %v1649_v13, %v1649_v13  ;;  %v1658_v15 = vcombine.high %v1649_v13, %v1649_v13  ;;  %v1665_v17 = vcombine.low %v1660_v16, %v1660_v16  ;;  %v515_v36 = vsel %vm514_vm7, %v1649_v13, 0 }
  0x1e   : > { %725 = vrot.lane.b32.xlu0 %v724_v12, %s1500_s26  ;;  %942 = vrot.lane.b32.xlu1 %v724_v12, %s1501_s27  ;;  %v1303_v38 = vcombine.low %v515_v36, %v515_v36  ;;  %v1304_v39 = vcombine.high %v515_v36, %v515_v36  ;;  %s1509_s26 = smov 95   ;;  %s1510_s27 = smov 94   ;;  %vm531_vm7 = vcmask 1039360   ;;  %v1345_v12 = vunpack.c.h.bf16 %v1343_v63 }
  0x20   : > { %1305 = vmatprep.subr.msk.bf16.mxu0 %vm537_vm1, %v1304_v39  ;;  %v594_v42 = vsel %vm537_vm1, %v1303_v38, 0 }
  0x21   : > { %600 = vmatpush1.bf16.msra.mxu0 %v594_v42 }
  0x22   : > { %1081 = vrot.lane.b32.xlu0 %v645_v11, %s1502_s28 }
  0x26   : > { %525 = vrot.lane.b32.xlu0 %v1653_v14, %s1503_s19 }
  0x2a   : > { %527 = vrot.lane.b32.xlu0 %v1658_v15, %s1503_s19 }
  0x2e   : > { %529 = vrot.lane.b32.xlu0 %v1665_v17, %s1503_s19 }
  0x8c   : > { %v647_v18 = vpop.permute.xlu0 %646  ;;  %v865_v20 = vpop.permute.xlu1 %864 }
  0x8d   : > { %v648_v19 = vrot.slane %v647_v18, 4  ;;  %v866_v23 = vrot.slane %v865_v20, 4 }
  0x8f   : > { %v650_v21 = vsel %vm649_vm8, %v648_v19, %v647_v18  ;;  %vm652_vm11 = vcmp.ne.s16.totalorder %v648_v19, 0  ;;  %vm870_vm12 = vcmp.ne.s16.totalorder %v866_v23, 0  ;;  %v868_v40 = vsel %vm867_vm15, %v866_v23, %v865_v20  ;;  %v1360_v19 = vld [vmem:[%s1922_s5 + $0x18] sm:$0xff]  }
  0x90   : > { %vm651_vm9 = vcmp.ne.s16.totalorder %v650_v21, 0  ;;  %v726_v22 = vpop.permute.xlu0 %725  ;;  %v654_v29 = vsel %vm652_vm11, %v1660_v16, 0  ;;  %v1671_v30 = vsel %vm870_vm12, %v1660_v16, 0  ;;  %v943_v41 = vpop.permute.xlu1 %942  ;;  %vm869_vm2 = vcmp.ne.s16.totalorder %v868_v40, 0 }
  0x91   : > { %v653_v24 = vsel %vm651_vm9, %v1649_v13, 0  ;;  %v727_v25 = vrot.slane %v726_v22, 4  ;;  %v1309_v31 = vcombine.low %v654_v29, %v654_v29  ;;  %v944_v43 = vrot.slane %v943_v41, 4 }
  0x92   : > { %v1307_v26 = vcombine.low %v653_v24, %v653_v24  ;;  %v1308_v28 = vcombine.high %v653_v24, %v653_v24  ;;  %v871_v44 = vsel %vm869_vm2, %v1649_v13, 0  ;;  %v1352_v18 = vunpack.c.l.bf16 %v1359_v8 }
  0x93   : > { %v729_v27 = vsel %vm728_vm10, %v727_v25, %v726_v22  ;;  %vm731_vm14 = vcmp.ne.s16.totalorder %v727_v25, 0  ;;  %v946_v45 = vsel %vm342_vm0, %v944_v43, %v943_v41  ;;  %v1319_v46 = vcombine.low %v871_v44, %v871_v44 }
  0x94   : > { %663 = vrot.lane.b32.xlu0 %v1307_v26, %s1504_s21  ;;  %vm730_vm13 = vcmp.ne.s16.totalorder %v729_v27, 0  ;;  %v733_v35 = vsel %vm731_vm14, %v1660_v16, 0  ;;  %vm947_vm3 = vcmp.ne.s16.totalorder %v946_v45, 0  ;;  %v1320_v47 = vcombine.high %v871_v44, %v871_v44  ;;  %v1082_v48 = vpop.permute.xlu0 %1081 }
  0x95   : > { %v732_v32 = vsel %vm730_vm13, %v1649_v13, 0  ;;  %v1314_v37 = vcombine.low %v733_v35, %v733_v35  ;;  %v1691_v49 = vsel %vm947_vm3, %v1649_v13, 0  ;;  %vm948_vm4 = vcmp.ne.s16.totalorder %v944_v43, 0 }
  0x96   : > { %v1312_v33 = vcombine.low %v732_v32, %v732_v32  ;;  %v1313_v34 = vcombine.high %v732_v32, %v732_v32  ;;  %v1083_v50 = vrot.slane %v1082_v48, 4  ;;  %v1324_v51 = vcombine.low %v1691_v49, %v1691_v49  ;;  %v427_v32 = vld [vmem:[%s1922_s5 + $0x20] sm:$0xf] }
  0x97   : > { %vm1084_vm0 = vcmask 277504   ;;  %v950_v52 = vsel %vm948_vm4, %v1660_v16, 0  ;;  %v1353_v20 = vunpack.c.h.bf16 %v1359_v8  ;;  %v1356_v25 = vunpack.c.l.bf16 %v1360_v19 }
  0x98   : > { %665 = vrot.lane.b32.xlu0 %v1308_v28, %s1504_s21  ;;  %v1085_v53 = vsel %vm1084_vm0, %v1083_v50, %v1082_v48  ;;  %v1326_v54 = vcombine.low %v950_v52, %v950_v52  ;;  %vm1087_vm6 = vcmp.ne.s16.totalorder %v1083_v50, 0  ;;  %v526_v59 = vpop.permute.xlu0 %525  ;;  %vm459_vm8 = vcmask 64512  }
  0x99   : > { %vm1086_vm5 = vcmp.ne.s16.totalorder %v1085_v53, 0  ;;  %v1089_v57 = vsel %vm1087_vm6, %v1660_v16, 0  ;;  %v436_v38 = vunpack.c.l.bf16 %v427_v32  ;;  %vm669_vm9 = vcmask 1031168  }
  0x9a   : > { %v1700_v55 = vsel %vm1086_vm5, %v1649_v13, 0  ;;  %v1333_v58 = vcombine.low %v1089_v57, %v1089_v57  ;;  %v1348_v13 = vunpack.c.l.bf16 %v1358_v2  ;;  %vm748_vm10 = vcmask 916480  }
  0x9b   : > { %v1331_v56 = vcombine.low %v1700_v55, %v1700_v55  ;;  %vm887_vm11 = vcmask 900096   ;;  %vm809_vm12 = vcmask 908288   ;;  %vm965_vm13 = vcmask 785408  }
  0x9c   : > { %667 = vrot.lane.b32.xlu0 %v1309_v31, %s1504_s21  ;;  %v528_v61 = vpop.permute.xlu0 %527  ;;  %v1357_v31 = vunpack.c.h.bf16 %v1360_v19  ;;  %vm1026_vm14 = vcmask 777216   ;;  %vm1104_vm15 = vcmask 769024  }
  0x9d   : > { %v532_v62 = vsel %vm531_vm7, %v526_v59, %v528_v61 }
  0x9e   : > { %v539_v1 = vsel %vm537_vm1, %v532_v62, 0 }
  0xa0   : > { %742 = vrot.lane.b32.xlu0 %v1312_v33, %s1505_s22  ;;  %v530_v5 = vpop.permute.xlu0 %529 }
  0xa1   : > { %v533_v9 = vsel %vm531_vm7, %v528_v61, %v530_v5 }
  0xa2   : > { %1301 = vmatprep.subr.msk.bf16.mxu1 %vm537_vm1, %v533_v9  ;;  %v1321_v9 = vcombine.low %v1671_v30, %v1671_v30  ;;  %v1332_v30 = vcombine.high %v1700_v55, %v1700_v55 }
  0xa3   : > { %545 = vmatpush1.bf16.msra.mxu1 %v539_v1 }
  0xa4   : > { %744 = vrot.lane.b32.xlu0 %v1313_v34, %s1505_s22 }
  0xa8   : > { %746 = vrot.lane.b32.xlu0 %v1314_v37, %s1505_s22  ;;  %s1341_s22 = sshll.u32 %s1581_s0, 8 }
  0xac   : > { %805 = vrot.lane.b32.xlu0 %v1658_v15, %s1506_s23 }
  0xb0   : > { %807 = vrot.lane.b32.xlu0 %v1665_v17, %s1506_s23 }
  0xb4   : > { %881 = vrot.lane.b32.xlu0 %v1319_v46, %s1507_s24 }
  0xb8   : > { %883 = vrot.lane.b32.xlu0 %v1320_v47, %s1507_s24 }
  0xbc   : > { %959 = vrot.lane.b32.xlu0 %v1324_v51, %s1508_s25 }
  0xc0   : > { %963 = vrot.lane.b32.xlu0 %v1326_v54, %s1508_s25 }
  0xc4   : > { %1022 = vrot.lane.b32.xlu0 %v1658_v15, %s1509_s26  ;;  %v1349_v15 = vunpack.c.h.bf16 %v1358_v2 }
  0xc8   : > { %1098 = vrot.lane.b32.xlu0 %v1331_v56, %s1510_s27 }
  0xcc   : > { %1102 = vrot.lane.b32.xlu0 %v1333_v58, %s1510_s27 }
  0xee   : > { %v415_v6 = vpop.f32.mrb[0].mxu0 }
  0xef   : > { %v416_v10 = vadd.f32 %v415_v6, %v341_v0  ;;  %v1367_v11 = vpop.f32.mrb[1].mxu0 }
  0xf1   : > { %v440_v16 = vrot.slane %v416_v10, %v439_v3 }
  0xf3   : > { %v1732_v21 = vmul.f32 %v1344_v7, %v440_v16  ;;  %v1734_v22 = vmul.f32 %v1345_v12, %v440_v16  ;;  %v1736_v23 = vmul.f32 %v1348_v13, %v440_v16  ;;  %v1738_v24 = vmul.f32 %v1349_v15, %v440_v16 }
  0xf4   : > { %v1740_v26 = vmul.f32 %v1352_v18, %v440_v16  ;;  %v1751_v33 = vmul.f32 %v1353_v20, %v440_v16  ;;  %v1757_v39 = vmul.f32 %v1356_v25, %v440_v16  ;;  %v1762_v43 = vmul.f32 %v1357_v31, %v440_v16 }
  0xf5   : > { %v450_v27 = vmul.f32 %v1732_v21, %v1732_v21  ;;  %v451_v28 = vmul.f32 %v1734_v22, %v1734_v22  ;;  %v452_v29 = vmul.f32 %v1736_v23, %v1736_v23  ;;  %v453_v34 = vmul.f32 %v1738_v24, %v1738_v24 }
  0xf6   : > { %v454_v40 = vmul.f32 %v1740_v26, %v1740_v26  ;;  %v455_v44 = vmul.f32 %v1751_v33, %v1751_v33  ;;  %v1767_v47 = vmul.f32 %v440_v16, %v436_v38  ;;  %v456_v48 = vmul.f32 %v1757_v39, %v1757_v39 }
  0xf7   : > { %v460_v35 = vsel %vm459_vm8, %v450_v27, 0.0  ;;  %v461_v36 = vsel %vm459_vm8, %v451_v28, 0.0  ;;  %v463_v41 = vsel %vm459_vm8, %v452_v29, 0.0  ;;  %v465_v45 = vsel %vm459_vm8, %v453_v34, 0.0 }
  0xf8   : > { %v462_v37 = vadd.f32 %v461_v36, %v460_v35  ;;  %v467_v50 = vsel %vm459_vm8, %v454_v40, 0.0  ;;  %v457_v52 = vmul.f32 %v1762_v43, %v1762_v43  ;;  %v469_v53 = vsel %vm459_vm8, %v455_v44, 0.0 }
  0xf9   : > { %v458_v56 = vmul.f32 %v1767_v47, %v1767_v47  ;;  %v471_v57 = vsel %vm459_vm8, %v456_v48, 0.0  ;;  %v1325_v12 = vcombine.high %v1691_v49, %v1691_v49  ;;  %v1176_v49 = vld [vmem:[%s1923_s6] sm:$0xff] }
  0xfa   : > { %v464_v42 = vadd.f32 %v463_v41, %v462_v37  ;;  %v473_v59 = vsel %vm459_vm8, %v457_v52, 0.0 }
  0xfb   : > { %v475_v62 = vsel %vm459_vm8, %v458_v56, 0.0 }
  0xfc   : > { %v466_v46 = vadd.f32 %v465_v45, %v464_v42 }
  0xfe   : > { %v468_v51 = vadd.f32 %v467_v50, %v466_v46 }
 0x100   : > { %v470_v54 = vadd.f32 %v469_v53, %v468_v51 }
 0x102   : > { %v472_v58 = vadd.f32 %v471_v57, %v470_v54 }
 0x104   : > { %v474_v61 = vadd.f32 %v473_v59, %v472_v58 }
 0x106   : > { %v476_v63 = vadd.f32 %v475_v62, %v474_v61  ;;  %v664_v2 = vpop.permute.xlu0 %663 }
 0x108   : > { %v477_v0 = vsel %vm459_vm8, %v476_v63, 0.0 }
 0x109   : > { %478 = vadd.xlane.f32.xlu1 %v477_v0 }
 0x10a   : > { %v666_v5 = vpop.permute.xlu0 %665 }
 0x10b   : > { %v670_v1 = vsel %vm669_vm9, %v664_v2, %v666_v5 }
 0x10c   : > { %v676_v38 = vsel %vm537_vm1, %v670_v1, 0 }
 0x10e   : > { %v668_v6 = vpop.permute.xlu0 %667 }
 0x10f   : > { %v671_v7 = vsel %vm669_vm9, %v666_v5, %v668_v6 }
 0x110   : > { %1310 = vmatprep.subr.msk.bf16.mxu1 %vm537_vm1, %v671_v7 }
 0x112   : > { %v743_v8 = vpop.permute.xlu0 %742 }
 0x116   : > { %v745_v10 = vpop.permute.xlu0 %744 }
 0x117   : > { %v749_v11 = vsel %vm748_vm10, %v743_v8, %v745_v10 }
 0x118   : > { %v755_v40 = vsel %vm537_vm1, %v749_v11, 0 }
 0x11a   : > { %803 = vrot.lane.b32.xlu1 %v1653_v14, %s1506_s23  ;;  %v747_v13 = vpop.permute.xlu0 %746  ;;  %s1873_s23 = scalar_lea.hbm %s1925_s8, %s1341_s22 }
 0x11b   : > { %v750_v15 = vsel %vm748_vm10, %v745_v10, %v747_v13 }
 0x11c   : > { %1315 = vmatprep.subr.msk.bf16.mxu0 %vm537_vm1, %v750_v15 }
 0x11e   : > { %885 = vrot.lane.b32.xlu1 %v1321_v9, %s1507_s24  ;;  %v806_v16 = vpop.permute.xlu0 %805 }
 0x122   : > { %961 = vrot.lane.b32.xlu1 %v1325_v12, %s1508_s25  ;;  %v808_v18 = vpop.permute.xlu0 %807  ;;  %s1160_s25 = sld [smem:[#allocation2]] }
 0x126   : > { %1020 = vrot.lane.b32.xlu1 %v1653_v14, %s1509_s26  ;;  %v882_v19 = vpop.permute.xlu0 %881 }
 0x12a   : > { %1024 = vrot.lane.b32.xlu1 %v1665_v17, %s1509_s26  ;;  %v884_v25 = vpop.permute.xlu0 %883  ;;  %s1295_s26 = sshll.u32 %s1614_s20, 1  ;;  %s321_s20 = sand.u32 1, %s1485_s30  }
 0x12b   : > { %v888_v46 = vsel %vm887_vm11, %v882_v19, %v884_v25  ;;  %s335_s19 = scalar_lea.vmem %s1924_s7, %s1295_s26  ;;  %s1293_s21 = sshll.u32 %s321_s20, 4 }
 0x12c   : > { %s323_s28 = scalar_lea.vmem [#allocation3], %s1293_s21  ;;  %s1195_s0 = scalar_lea.sflag [#allocation4], %s321_s20 }
 0x12d   : > { %s1209_s11 = sshll.u32 %s323_s28, 4  ;;  %s1875_s11 = int_to_ptr.vmem [resolvable:$true] %s1209_s11 }
 0x12e   : > { %1100 = vrot.lane.b32.xlu1 %v1332_v30, %s1510_s27  ;;  %v960_v28 = vpop.permute.xlu0 %959  ;;  %s1431_s24 = scalar_lea.vmem %s1875_s11, 256 }
 0x12f   : > { %p1432_p11 = scmp.ne.s32.totalorder %s1875_s11, %s1431_s24 }
 0x131   : > { %p1433_p12 = pnand %p1432_p11, %p1598_p5 }
 0x132   : > { %1179 = vperm.xlu1 %1424, %v1176_v49   ;;  %v964_v29 = vpop.permute.xlu0 %963 }
 0x133   : > { %p1434_p13 = pneg %p1433_p12 }
 0x136   : > { %v1023_v41 = vpop.permute.xlu0 %1022 }
 0x13a   : > { %v1099_v51 = vpop.permute.xlu0 %1098 }
 0x13e   : > { %v1103_v59 = vpop.permute.xlu0 %1102 }
 0x196   : > { %v479_v20 = vpop.xlane.xlu1 %478 }
 0x197   : > { %v480_v27 = vadd.f32 1e-08, %v479_v20 }
 0x199   : > { %1429 = vrsqrt.f32 %v480_v27 }
 0x19a   : > { %v804_v14 = vpop.permute.xlu1 %803 }
 0x19b   : > { %v810_v45 = vsel %vm809_vm12, %v804_v14, %v806_v16 }
 0x19e   : > { %v886_v17 = vpop.permute.xlu1 %885 }
 0x19f   : > { %v889_v37 = vsel %vm887_vm11, %v884_v25, %v886_v17 }
 0x1a2   : > { %v962_v31 = vpop.permute.xlu1 %961 }
 0x1a3   : > { %v1801_v55 = vpop.eup %1429  ;;  %v967_v53 = vsel %vm965_vm13, %v962_v31, %v964_v29  ;;  %v966_v62 = vsel %vm965_vm13, %v960_v28, %v962_v31 }
 0x1a4   : > { %v483_v32 = vmul.f32 %v1801_v55, %v1734_v22  ;;  %v482_v34 = vmul.f32 %v1801_v55, %v1732_v21  ;;  %v811_v22 = vsel %vm809_vm12, %v806_v16, %v808_v18  ;;  %v484_v21 = vmul.f32 %v1801_v55, %v1736_v23 }
 0x1a5   : > { %v485_v44 = vmul.f32 %v1801_v55, %v1738_v24  ;;  %v816_v23 = vsel %vm537_vm1, %v810_v45, 0  ;;  %v894_v24 = vsel %vm537_vm1, %v888_v46, 0  ;;  %v486_v56 = vmul.f32 %v1801_v55, %v1740_v26 }
 0x1a6   : > { %v492_v35 = vpack.c.bf16 %v483_v32, %v483_v32  ;;  %v491_v36 = vpack.c.bf16 %v482_v34, %v482_v34  ;;  %v1021_v42 = vpop.permute.xlu1 %1020  ;;  %v493_v48 = vpack.c.bf16 %v484_v21, %v484_v21  ;;  %v487_v57 = vmul.f32 %v1801_v55, %v1751_v33 }
 0x1a7   : > { %v494_v50 = vpack.c.bf16 %v485_v44, %v485_v44  ;;  %v1027_v58 = vsel %vm1026_vm14, %v1021_v42, %v1023_v41  ;;  %v495_v0 = vpack.c.bf16 %v486_v56, %v486_v56  ;;  %v972_v5 = vsel %vm537_vm1, %v966_v62, 0 }
 0x1a8   : > { %1302 = vmatmul.mubr.msk.bf16.vlgmr.msra.gmra.mrb[0].mxu1 %vm459_vm8, %v492_v35  ;;  %1306 = vmatmul.mubr.msk.bf16.vlgmr.msra.gmra.mrb[4].mxu0 %vm459_vm8, %v491_v36  ;;  %v1033_v63 = vsel %vm537_vm1, %v1027_v58, 0  ;;  %v496_v2 = vpack.c.bf16 %v487_v57, %v487_v57  ;;  %v488_v33 = vmul.f32 %v1801_v55, %v1757_v39  ;;  %v489_v1 = vmul.f32 %v1801_v55, %v1762_v43 }
 0x1a9   : > { %682 = vmatpush1.bf16.msra.mxu1 %v676_v38  ;;  %761 = vmatpush1.bf16.msra.mxu0 %v755_v40  ;;  %v490_v39 = vmul.f32 %v1801_v55, %v1767_v47 }
 0x1aa   : > { %1317 = vmatprep.subr.msk.bf16.mxu1 %vm537_vm1, %v811_v22  ;;  %1322 = vmatprep.subr.msk.bf16.mxu0 %vm537_vm1, %v889_v37  ;;  %v1025_v52 = vpop.permute.xlu1 %1024  ;;  %v497_v8 = vpack.c.bf16 %v488_v33, %v488_v33  ;;  %v498_v9 = vpack.c.bf16 %v489_v1, %v489_v1 }
 0x1ab   : > { %713 = vmatprep.mubr.bf16.mxu1 %v1497_v4  ;;  %792 = vmatprep.mubr.bf16.mxu0 %v1497_v4  ;;  %v1028_v54 = vsel %vm1026_vm14, %v1023_v41, %v1025_v52  ;;  %v499_v10 = vpack.c.bf16 %v490_v39, %v490_v39 }
 0x1ae   : > { %v1101_v61 = vpop.permute.xlu1 %1100 }
 0x1af   : > { %v1106_v26 = vsel %vm1104_vm15, %v1101_v61, %v1103_v59  ;;  %v1105_v6 = vsel %vm1104_vm15, %v1099_v51, %v1101_v61  ;;  %v1161_v51 = vstv %s1160_s25  ;;  %s1511_s25 = smov [#allocation3]  }
 0x1b0   : > { %1311 = vmatmul.mubr.msk.bf16.vlgmr.msra.gmra.mrb[4].mxu1 %vm459_vm8, %v493_v48  ;;  %1316 = vmatmul.mubr.msk.bf16.vlgmr.msra.gmra.mrb[8].mxu0 %vm459_vm8, %v494_v50  ;;  %v1111_v7 = vsel %vm537_vm1, %v1105_v6, 0  ;;  %v1159_v50 = vld [vmem:[%s335_s19] sm:$0x3]  ;;  %s1435_s26 = sshll.u32 %s1511_s25, 4  ;;  %s1436_s26 = int_to_ptr.vmem [resolvable:$false] %s1435_s26 }
 0x1b1   : > { %822 = vmatpush1.bf16.msra.mxu1 %v816_v23  ;;  %900 = vmatpush1.bf16.msra.mxu0 %v894_v24  ;;  %v1162_v61 = vmul.f32 %v1161_v51, %v1159_v50  ;;  %s1437_s27 = scalar_lea.vmem %s1436_s26, 512  ;;  %p1438_p0 = scmp.lt.s32.totalorder %s1875_s11, %s1436_s26 }
 0x1b2   : > { %1327 = vmatprep.subr.msk.bf16.mxu1 %vm537_vm1, %v967_v53  ;;  %853 = vmatprep.mubr.bf16.mxu1 %v1497_v4  ;;  %p1439_p1 = scmp.lt.s32.totalorder %s1437_s27, %s1431_s24 }
 0x1b3   : > { %931 = vmatprep.mubr.bf16.mxu0 %v1497_v4  ;;  %1329 = vmatprep.subr.msk.bf16.mxu0 %vm537_vm1, %v1028_v54 }
 0x1b4   : > { %p1440_p2 = por %p1439_p1, %p1438_p0 }
 0x1b6   : > { %p1441_p3 = pnand %p1440_p2, %p1434_p13 }
 0x1b8   : > { %1318 = vmatmul.mubr.msk.bf16.vlgmr.msra.gmra.mrb[8].mxu1 %vm459_vm8, %v495_v0  ;;  %1323 = vmatmul.mubr.msk.bf16.vlgmr.msra.gmra.mrb[12].mxu0 %vm459_vm8, %v496_v2  ;;  %v1167_v0 = vrot.slane %v1162_v61, %v439_v3 }
 0x1b9   : > { %978 = vmatpush1.bf16.msra.mxu1 %v972_v5  ;;  %1039 = vmatpush1.bf16.msra.mxu0 %v1033_v63  ;;  %v1170_v63 = vsub.s32 1, %v1710_v60 }
 0x1ba   : > { %1334 = vmatprep.subr.msk.bf16.mxu1 %vm537_vm1, %v1106_v26  ;;  %1009 = vmatprep.mubr.bf16.mxu1 %v1497_v4 }
 0x1bb   : > { %1070 = vmatprep.mubr.bf16.mxu0 %v1497_v4  ;;  %v1171_v26 = vrot.slane %v1162_v61, %v1170_v63 }
 0x1c0   : > { %1328 = vmatmul.mubr.msk.bf16.vlgmr.msra.gmra.mrb[12].mxu1 %vm459_vm8, %v497_v8  ;;  %1330 = vmatmul.mubr.msk.bf16.vlgmr.msra.gmra.mrb[16].mxu0 %vm459_vm8, %v498_v9 }
 0x1c1   : > { %1117 = vmatpush1.bf16.msra.mxu1 %v1111_v7  ;;  %1148 = vmatprep.mubr.bf16.mxu1 %v1497_v4  ;;  %v1180_v7 = vpop.permute.xlu1 %1179 }
 0x1c8   : > { %1335 = vmatmul.mubr.msk.bf16.vlgmr.msra.gmra.mrb[16].mxu1 %vm459_vm8, %v499_v10 }
 0x27b   : > { %v578_v43 = vpop.f32.mrb[0].mxu1  ;;  %v633_v11 = vpop.f32.mrb[4].mxu0 }
 0x27c   : > { %v634_v12 = vadd.f32 %v633_v11, %v578_v43  ;;  %v580_v13 = vpop.f32.mrb[1].mxu1  ;;  %v635_v15 = vpop.f32.mrb[5].mxu0 }
 0x27d   : > { %v636_v30 = vadd.f32 %v635_v15, %v580_v13  ;;  %v582_v49 = vpop.f32.mrb[2].mxu1  ;;  %v637_v16 = vpop.f32.mrb[6].mxu0 }
 0x27e   : > { %v583_v18 = vpop.f32.mrb[3].mxu1  ;;  %v638_v19 = vpop.f32.mrb[7].mxu0 }
 0x283   : > { %v715_v20 = vpop.f32.mrb[4].mxu1  ;;  %v794_v25 = vpop.f32.mrb[8].mxu0 }
 0x284   : > { %v722_v27 = vadd.f32 %v715_v20, %v634_v12  ;;  %v717_v4 = vpop.f32.mrb[5].mxu1  ;;  %v796_v14 = vpop.f32.mrb[9].mxu0 }
 0x285   : > { %v723_v28 = vadd.f32 %v717_v4, %v636_v30  ;;  %v719_v47 = vpop.f32.mrb[6].mxu1  ;;  %v798_v17 = vpop.f32.mrb[10].mxu0 }
 0x286   : > { %v801_v29 = vadd.f32 %v794_v25, %v722_v27  ;;  %v720_v31 = vpop.f32.mrb[7].mxu1  ;;  %v799_v55 = vpop.f32.mrb[11].mxu0 }
 0x287   : > { %v802_v32 = vadd.f32 %v796_v14, %v723_v28 }
 0x28b   : > { %v855_v34 = vpop.f32.mrb[8].mxu1  ;;  %v933_v35 = vpop.f32.mrb[12].mxu0 }
 0x28c   : > { %v862_v36 = vadd.f32 %v855_v34, %v801_v29  ;;  %v857_v37 = vpop.f32.mrb[9].mxu1  ;;  %v935_v38 = vpop.f32.mrb[13].mxu0 }
 0x28d   : > { %v863_v40 = vadd.f32 %v857_v37, %v802_v32  ;;  %v859_v41 = vpop.f32.mrb[10].mxu1  ;;  %v937_v42 = vpop.f32.mrb[14].mxu0 }
 0x28e   : > { %v940_v22 = vadd.f32 %v933_v35, %v862_v36  ;;  %v860_v21 = vpop.f32.mrb[11].mxu1  ;;  %v938_v44 = vpop.f32.mrb[15].mxu0 }
 0x28f   : > { %v941_v45 = vadd.f32 %v935_v38, %v863_v40 }
 0x293   : > { %v1011_v46 = vpop.f32.mrb[12].mxu1  ;;  %v1072_v48 = vpop.f32.mrb[16].mxu0 }
 0x294   : > { %v1018_v52 = vadd.f32 %v1011_v46, %v940_v22  ;;  %v1013_v53 = vpop.f32.mrb[13].mxu1  ;;  %v1074_v23 = vpop.f32.mrb[17].mxu0 }
 0x295   : > { %v1019_v24 = vadd.f32 %v1013_v53, %v941_v45  ;;  %v1015_v54 = vpop.f32.mrb[14].mxu1  ;;  %v1076_v56 = vpop.f32.mrb[18].mxu0 }
 0x296   : > { %v1079_v57 = vadd.f32 %v1072_v48, %v1018_v52  ;;  %v1016_v58 = vpop.f32.mrb[15].mxu1  ;;  %v1077_v59 = vpop.f32.mrb[19].mxu0 }
 0x297   : > { %v1080_v62 = vadd.f32 %v1074_v23, %v1019_v24 }
 0x29b   : > { %v1150_v2 = vpop.f32.mrb[16].mxu1 }
 0x29c   : > { %v1157_v5 = vadd.f32 %v1150_v2, %v1079_v57  ;;  %v1152_v33 = vpop.f32.mrb[17].mxu1 }
 0x29d   : > { %v1158_v1 = vadd.f32 %v1152_v33, %v1080_v62  ;;  %v1154_v6 = vpop.f32.mrb[18].mxu1 }
 0x29e   : > { %v1155_v8 = vpop.f32.mrb[19].mxu1  ;;  %v1174_v9 = vadd.f32 %v1167_v0, %v1157_v5 }
 0x29f   : > { %v1175_v39 = vadd.f32 %v1171_v26, %v1158_v1 }
 0x2a0   : > { %v1182_v10 = vadd.f32 %v1180_v7, %v1174_v9 }
 0x2a1   : > { %v1183_v43 = vadd.f32 %v1180_v7, %v1175_v39 }
 0x2a2   : > { %vm1184_vm1 = vcmp.ge.f32.partialorder %v1182_v10, 0.0  ;;  %v1186_v60 = vmul.f32 1.4142135, %v1182_v10  ;;  %v1188_v3 = vmul.f32 0.014142135, %v1182_v10 }
 0x2a3   : > { %vm1185_vm2 = vcmp.ge.f32.partialorder %v1183_v43, 0.0  ;;  %v1187_v11 = vmul.f32 1.4142135, %v1183_v43  ;;  %v1189_v12 = vmul.f32 0.014142135, %v1183_v43 }
 0x2a4   : > { %v1190_v13 = vsel %vm1184_vm1, %v1186_v60, %v1188_v3 }
 0x2a5   : > { %v1191_v15 = vsel %vm1185_vm2, %v1187_v11, %v1189_v12  ;;  %1192 = vst [vmem:[%s323_s28] sm:$0xff] %v1190_v13 }
 0x2a6   : > { %1193 = vst [vmem:[%s323_s28 + $0x8] sm:$0xff] %v1191_v15 }
 0x2a7   : > { %1444 = shalt.err (!%p1441_p3)
}
 0x2a8   : > { %s1445_s18 = scalar_lea.hbm %s1873_s23, 256  ;;  %s1449_s21 = scalar_lea.hbm %s1925_s8, 512 }
 0x2a9   : > { %p1446_p4 = scmp.ne.s32.totalorder %s1873_s23, %s1445_s18  ;;  %p1450_p9 = scmp.lt.u32.totalorder %s1873_s23, %s1925_s8 }
 0x2aa   : > { %p1451_p10 = scmp.lt.u32.totalorder %s1449_s21, %s1445_s18  ;;  %p1453_p12 = scmp.lt.u32.totalorder %s1445_s18, %s1873_s23 }
 0x2ab   : > { %p1447_p7 = pnand %p1446_p4, %p1598_p5 }
 0x2ac   : > { %p1452_p11 = por %p1451_p10, %p1450_p9 }
 0x2ad   : > { %p1448_p8 = pneg %p1447_p7 }
 0x2ae   : > { %p1454_p13 = por %p1453_p12, %p1452_p11 }
 0x2b0   : > { %p1455_p0 = pnand %p1454_p13, %p1448_p8 }
 0x2b2   : > { %1458 = shalt.err (!%p1455_p0)
}
 0x2b3   : > { %1369 = dma.vmem_to_hbm [thread:$0]  (%p1598_p5), %s1875_s11, 256, %s1873_s23, %s1195_s0  }
 0x2b4 PF: > { %p1375_p1 = scmp.ge.s32.totalorder %s1493_s10, 2  ;;  %s1221_s13 = sand.u32 1, %s1481_s29  }
 0x2b5   : > { %s1222_s14 = scalar_lea.sflag [#allocation4], %s1221_s13 }
 0x2b6   : > { %p1372_p2 = pnand %p1375_p1, %p1602_p6 }
 0x2b8   : > { %1476 = dma.done.wait (!%p1372_p2), %s1222_s14, 256  }
 0x2b9   : > { %1478 = vsyncadd (!%p1372_p2), %s1222_s14, 4294967040  ;;  %p19_p3 = scmp.ge.s32.totalorder %s1585_s12, 4   ;;  %s1932_s29 = smov %s1485_s30 }
 0x2ba   : > { %s1933_s30 = smov %s1489_s9  ;;  %s1934_s9 = smov %s1596_s15 }
 0x2bb   : > { %s1935_s10 = smov %s1585_s12  ;;  %21 = sbr.rel (!%p19_p3) target bundleno = 5 (0x5), region = 93 }
 0x2c2   :  { %1227 = vsyncpa [#allocation4], 1 }
 0x2c3   :  { %1229 = vsyncpa [#allocation4 + $0x1], 1 }

</bundles_post_ra>
